<compile_context>
chip_gen: v7x
topology: tpu7x:2x2x1
jax: 0.10.0
libtpu: 0.0.40
codegen_flags: <defaults>
</compile_context>

<pallas_src>
import jax
import jax.numpy as jnp
from jax.experimental import pallas as pl
from jax.experimental.pallas import tpu as pltpu

H = 128          # hidden width of each branch
FUSED_H = 2 * H  # fused layer-1 width (policy ++ value)


def _round_up(x, m):
    return ((x + m - 1) // m) * m


def _a3c_fused_kernel(x_ref, w1_ref, b1_ref, w2_ref, b2_ref, out_ref):
    # Fused layer 1: [TB, S] @ [S, 256] (bf16 operands, f32 accumulate) + b -> tanh
    x = x_ref[...].astype(jnp.bfloat16)
    h = jnp.dot(x, w1_ref[...], preferred_element_type=jnp.float32) + b1_ref[...]
    h = jnp.tanh(h)                          # f32 VPU/EUP (v5e has no bf16 VPU/EUP)
    # Fused block-diagonal layer 2: [TB, 256] @ [256, out_w] + b
    # cols 0..P-1 = policy logits, col P = value, cols > P = zero padding.
    out_ref[...] = (
        jnp.dot(h.astype(jnp.bfloat16), w2_ref[...],
                preferred_element_type=jnp.float32)
        + b2_ref[...]
    )  # [TB, out_w] lane-dense store


def init_params(key, state_size, num_agents, action_size):
    """N(0, 0.1) weights, zero biases (set_init convention). Weights stored [in, out]."""
    P = num_agents * action_size
    k1, k2, k3, k4 = jax.random.split(key, 4)
    wpi1 = 0.1 * jax.random.normal(k1, (state_size, H), jnp.float32)
    bpi1 = jnp.zeros((1, H), jnp.float32)
    wpi2 = 0.1 * jax.random.normal(k2, (H, P), jnp.float32)
    bpi2 = jnp.zeros((1, P), jnp.float32)
    wv1 = 0.1 * jax.random.normal(k3, (state_size, H), jnp.float32)
    bv1 = jnp.zeros((1, H), jnp.float32)
    wv2 = 0.1 * jax.random.normal(k4, (H, 1), jnp.float32)
    bv2 = jnp.zeros((1, 1), jnp.float32)
    return (wpi1, bpi1, wpi2, bpi2, wv1, bv1, wv2, bv2)


def fuse_params(params, num_agents, action_size):
    """Fold the 4 Linear layers into 2 fused weights (done once, at init time).

    Weights are stored in bf16 (MXU operands); biases stay f32 (VPU adds).
    """
    wpi1, bpi1, wpi2, bpi2, wv1, bv1, wv2, bv2 = params
    P = num_agents * action_size
    out_w = max(128, _round_up(P + 1, 128))     # lane-dense padded width

    # Layer 1: concat policy/value along the output dim.
    w1 = jnp.concatenate([wpi1, wv1], axis=1)   # [S, 256]
    b1 = jnp.concatenate([bpi1, bv1], axis=1)   # [1, 256]

    # Layer 2: block-diagonal packing into one [256, out_w] weight.
    w2 = jnp.zeros((FUSED_H, out_w), jnp.float32)
    w2 = w2.at[:H, :P].set(wpi2)                # policy head -> cols 0..P-1
    w2 = w2.at[H:, P].set(wv2[:, 0])            # value head  -> col P
    b2 = jnp.zeros((1, out_w), jnp.float32)
    b2 = b2.at[:, :P].set(bpi2)
    b2 = b2.at[:, P].set(bv2[0, 0])
    return (w1.astype(jnp.bfloat16), b1,
            w2.astype(jnp.bfloat16), b2)


def a3c_forward(state, fused_params, num_agents, action_size, *, block_b=512):
    """Fused actor-critic forward in a single batch-tiled Pallas kernel.

    state: [B, state_size] float32
    returns: (logits [B, num_agents, action_size], value [B, 1]) in float32
    """
    B, S = state.shape
    P = num_agents * action_size
    w1, b1, w2, b2 = fused_params
    out_w = w2.shape[1]

    # Batch tile: multiple of 8 sublanes, capped at block_b (v7x-safe footprint).
    TB = min(block_b, _round_up(B, 8))
    B_pad = _round_up(B, TB)
    if B_pad != B:
        state = jnp.pad(state, ((0, B_pad - B), (0, 0)))
    n_tiles = B_pad // TB

    cost = pl.CostEstimate(
        flops=int(2 * B_pad * (S * FUSED_H + FUSED_H * out_w)),
        transcendentals=int(B_pad * FUSED_H),
        bytes_accessed=int(4 * B_pad * (S + out_w)
                           + 2 * (S * FUSED_H + FUSED_H * out_w)
                           + 4 * (FUSED_H + out_w)),
    )

    out = pl.pallas_call(
        _a3c_fused_kernel,
        out_shape=jax.ShapeDtypeStruct((B_pad, out_w), jnp.float32),
        grid=(n_tiles,),
        in_specs=[
            pl.BlockSpec((TB, S), lambda i: (i, 0)),            # state tile
            pl.BlockSpec((S, FUSED_H), lambda i: (0, 0)),        # w1 (resident)
            pl.BlockSpec((1, FUSED_H), lambda i: (0, 0)),        # b1 (resident)
            pl.BlockSpec((FUSED_H, out_w), lambda i: (0, 0)),    # w2 (resident)
            pl.BlockSpec((1, out_w), lambda i: (0, 0)),          # b2 (resident)
        ],
        out_specs=pl.BlockSpec((TB, out_w), lambda i: (i, 0)),
        compiler_params=pltpu.CompilerParams(
            dimension_semantics=("parallel",),                   # v7x: 2 TCs split batch
        ),
        cost_estimate=cost,
    )(state, w1, b1, w2, b2)

    logits = out[:B, :P].reshape(B, num_agents, action_size)
    value = out[:B, P:P + 1]
    return logits, value


def reference_forward(state, params, num_agents, action_size):
    """Pure-JAX f32 reference on the UNFUSED parameters (module semantics)."""
    wpi1, bpi1, wpi2, bpi2, wv1, bv1, wv2, bv2 = params
    h_pi = jnp.tanh(state @ wpi1 + bpi1)
    logits = (h_pi @ wpi2 + bpi2).reshape(-1, num_agents, action_size)
    h_v = jnp.tanh(state @ wv1 + bv1)
    value = h_v @ wv2 + bv2
    return logits, value


def reference_forward_matched(state, fused_params, num_agents, action_size):
    """Pure-JAX reference following the kernel's exact numeric path (bf16 MXU ops)."""
    w1, b1, w2, b2 = fused_params
    P = num_agents * action_size
    h = jnp.tanh(
        jnp.dot(state.astype(jnp.bfloat16), w1,
                preferred_element_type=jnp.float32) + b1)
    out = jnp.dot(h.astype(jnp.bfloat16), w2,
                  preferred_element_type=jnp.float32) + b2
    B = state.shape[0]
    return out[:, :P].reshape(B, num_agents, action_size), out[:, P:P + 1]


if __name__ == "__main__":
    # Small synthetic config consistent with the module's __init__
    batch = 8
    state_size = 32
    num_agents = 4
    action_size = 5

    key = jax.random.PRNGKey(0)
    kx, kp = jax.random.split(key)
    state = jax.random.normal(kx, (batch, state_size), jnp.float32)
    params = init_params(kp, state_size, num_agents, action_size)
    fused = fuse_params(params, num_agents, action_size)

    logits, value = a3c_forward(state, fused, num_agents, action_size)
    logits, value = jax.block_until_ready((logits, value))
    assert logits.shape == (batch, num_agents, action_size)
    assert value.shape == (batch, 1)

    # Check 1: against a matched-precision (bf16 operand) pure-JAX reference.
    m_logits, m_value = reference_forward_matched(state, fused, num_agents, action_size)
    assert jnp.allclose(logits, m_logits, atol=5e-3, rtol=5e-3)
    assert jnp.allclose(value, m_value, atol=5e-3, rtol=5e-3)

    # Check 2: against the full-f32 unfused reference (loose tol for bf16 weights).
    ref_logits, ref_value = reference_forward(state, params, num_agents, action_size)
    assert jnp.allclose(logits, ref_logits, atol=5e-2, rtol=5e-2)
    assert jnp.allclose(value, ref_value, atol=5e-2, rtol=5e-2)

    # Check 3: non-multiple-of-8 batch exercises the padding / tiling path.
    state13 = jax.random.normal(jax.random.PRNGKey(1), (13, state_size), jnp.float32)
    l13, v13 = a3c_forward(state13, fused, num_agents, action_size)
    l13, v13 = jax.block_until_ready((l13, v13))
    r_l13, r_v13 = reference_forward(state13, params, num_agents, action_size)
    assert l13.shape == (13, num_agents, action_size) and v13.shape == (13, 1)
    assert jnp.allclose(l13, r_l13, atol=5e-2, rtol=5e-2)
    assert jnp.allclose(v13, r_v13, atol=5e-2, rtol=5e-2)

    print("KERNEL_OK")
</pallas_src>

<mosaic_0001>
module attributes {stable_mosaic.version = 11 : i64} {
  func.func @_a3c_fused_kernel(%arg0: i32, %arg1: memref<8x32xf32, #tpu.memory_space<vmem>>, %arg2: memref<32x256xbf16, #tpu.memory_space<vmem>>, %arg3: memref<1x256xf32, #tpu.memory_space<vmem>>, %arg4: memref<256x128xbf16, #tpu.memory_space<vmem>>, %arg5: memref<1x128xf32, #tpu.memory_space<vmem>>, %arg6: memref<8x128xf32, #tpu.memory_space<vmem>>) attributes {dimension_semantics = [#tpu.dimension_semantics<parallel>], iteration_bounds = array<i64: 1>, scalar_prefetch = 0 : i64, scratch_operands = 0 : i64, tpu.core_type = #tpu.core_type<tc>, window_params = [{transform_indices = @transform_0, window_bounds = array<i64: 8, 32>}, {pipeline_mode = #tpu.pipeline_mode<synchronous>, transform_indices = @transform_1, window_bounds = array<i64: 32, 256>}, {pipeline_mode = #tpu.pipeline_mode<synchronous>, transform_indices = @transform_2, window_bounds = array<i64: 1, 256>}, {pipeline_mode = #tpu.pipeline_mode<synchronous>, transform_indices = @transform_3, window_bounds = array<i64: 256, 128>}, {pipeline_mode = #tpu.pipeline_mode<synchronous>, transform_indices = @transform_4, window_bounds = array<i64: 1, 128>}, {transform_indices = @transform_5, window_bounds = array<i64: 8, 128>}]} {
    %c0 = arith.constant 0 : index
    %c0_0 = arith.constant 0 : index
    %0 = vector.load %arg1[%c0, %c0_0] : memref<8x32xf32, #tpu.memory_space<vmem>>, vector<8x32xf32>
    %1 = arith.truncf %0 : vector<8x32xf32> to vector<8x32xbf16>
    %c0_1 = arith.constant 0 : index
    %c0_2 = arith.constant 0 : index
    %2 = vector.load %arg2[%c0_1, %c0_2] : memref<32x256xbf16, #tpu.memory_space<vmem>>, vector<32x256xbf16>
    %cst = arith.constant dense<0.000000e+00> : vector<8x256xf32>
    %3 = tpu.matmul %1, %2, %cst {dimension_numbers = #tpu.dot_dimension_numbers<[1], [0], [0], [1], [0, 0, 1, 1], [], []>} : vector<8x32xbf16>, vector<32x256xbf16>, vector<8x256xf32> -> vector<8x256xf32>
    %c0_3 = arith.constant 0 : index
    %c0_4 = arith.constant 0 : index
    %4 = vector.load %arg3[%c0_3, %c0_4] : memref<1x256xf32, #tpu.memory_space<vmem>>, vector<1x256xf32>
    %5 = vector.broadcast %4 : vector<1x256xf32> to vector<8x256xf32>
    %6 = arith.addf %3, %5 : vector<8x256xf32>
    %7 = math.tanh %6 : vector<8x256xf32>
    %8 = arith.truncf %7 : vector<8x256xf32> to vector<8x256xbf16>
    %c0_5 = arith.constant 0 : index
    %c0_6 = arith.constant 0 : index
    %9 = vector.load %arg4[%c0_5, %c0_6] : memref<256x128xbf16, #tpu.memory_space<vmem>>, vector<256x128xbf16>
    %cst_7 = arith.constant dense<0.000000e+00> : vector<8x128xf32>
    %10 = tpu.matmul %8, %9, %cst_7 {dimension_numbers = #tpu.dot_dimension_numbers<[1], [0], [0], [1], [0, 0, 1, 1], [], []>} : vector<8x256xbf16>, vector<256x128xbf16>, vector<8x128xf32> -> vector<8x128xf32>
    %c0_8 = arith.constant 0 : index
    %c0_9 = arith.constant 0 : index
    %11 = vector.load %arg5[%c0_8, %c0_9] : memref<1x128xf32, #tpu.memory_space<vmem>>, vector<1x128xf32>
    %12 = vector.broadcast %11 : vector<1x128xf32> to vector<8x128xf32>
    %13 = arith.addf %10, %12 : vector<8x128xf32>
    %c0_10 = arith.constant 0 : index
    %c0_11 = arith.constant 0 : index
    %14 = vector.load %arg6[%c0_10, %c0_11] : memref<8x128xf32, #tpu.memory_space<vmem>>, vector<8x128xf32>
    tpu.vector_store %arg6[%c0_10, %c0_11], %13 {strides = array<i32>} : memref<8x128xf32, #tpu.memory_space<vmem>>, vector<8x128xf32>,
    return
  }
  func.func @transform_0(%arg0: i32) -> (i32, i32) {
    %c0_i32 = arith.constant 0 : i32
    %c0_i32_0 = arith.constant 0 : i32
    return %arg0, %c0_i32 : i32, i32
  }
  func.func @transform_1(%arg0: i32) -> (i32, i32) {
    %c0_i32 = arith.constant 0 : i32
    %c0_i32_0 = arith.constant 0 : i32
    %c0_i32_1 = arith.constant 0 : i32
    return %c0_i32, %c0_i32_0 : i32, i32
  }
  func.func @transform_2(%arg0: i32) -> (i32, i32) {
    %c0_i32 = arith.constant 0 : i32
    %c0_i32_0 = arith.constant 0 : i32
    %c0_i32_1 = arith.constant 0 : i32
    return %c0_i32, %c0_i32_0 : i32, i32
  }
  func.func @transform_3(%arg0: i32) -> (i32, i32) {
    %c0_i32 = arith.constant 0 : i32
    %c0_i32_0 = arith.constant 0 : i32
    %c0_i32_1 = arith.constant 0 : i32
    return %c0_i32, %c0_i32_0 : i32, i32
  }
  func.func @transform_4(%arg0: i32) -> (i32, i32) {
    %c0_i32 = arith.constant 0 : i32
    %c0_i32_0 = arith.constant 0 : i32
    %c0_i32_1 = arith.constant 0 : i32
    return %c0_i32, %c0_i32_0 : i32, i32
  }
  func.func @transform_5(%arg0: i32) -> (i32, i32) {
    %c0_i32 = arith.constant 0 : i32
    %c0_i32_0 = arith.constant 0 : i32
    return %arg0, %c0_i32 : i32, i32
  }
}

</mosaic_0001>

<bundles_post_ra>
// kernel: tpu_custom_call.1
= control target key start
LH: loop header
LB: loop body
LE: loop exit
PB: predicated region body
PF: predicated region fallthrough
CT: control target
= control target key end

     0   :  { %10 = vsyncpa [#allocation3], 0  ;;  %s606_s0 = inlined_call_operand.hbm [shape: f32[8,32], index: 0, kind: input, shape index: {}]   ;;  %s607_s1 = inlined_call_operand.hbm [shape: bf16[32,256], index: 1, kind: input, shape index: {}]   ;;  %s608_s2 = inlined_call_operand.vmem [shape: f32[1,256], index: 2, kind: input, shape index: {}]   ;;  %s609_s3 = inlined_call_operand.hbm [shape: bf16[256,128], index: 3, kind: input, shape index: {}]   ;;  %s610_s4 = inlined_call_operand.vmem [shape: f32[1,128], index: 4, kind: input, shape index: {}]   ;;  %s611_s5 = inlined_call_operand.hbm [shape: f32[8,128], index: 5, kind: output, shape index: {}]  }
   0x1   :  { %11 = vsyncpa [#allocation6], 0 }
   0x2   :  { %12 = vsyncpa [#allocation4], 0  ;;  %s513_s18 = smov [#allocation5]   ;;  %s419_s22 = scalar_lea.hbm %s607_s1, 512 }
   0x3   :  { %s28_s19 = sshll.u32 %s513_s18, 4  ;;  %p420_p0 = scmp.ne.s32.totalorder %s607_s1, %s419_s22  ;;  %s29_s19 = int_to_ptr.vmem [resolvable:$true] %s28_s19 }
   0x4   :  { %p423_p1 = scmp.lt.u32.totalorder %s419_s22, %s607_s1 }
   0x6   :  { %p425_p2 = pnand %p423_p1, %p420_p0 }
   0x8   :  { %428 = shalt.err (!%p425_p2)
}
   0x9   :  { %s429_s27 = scalar_lea.vmem %s29_s19, 512  ;;  %p434_p4 = scmp.lt.s32.totalorder %s29_s19, %s29_s19 }
   0xa   :  { %p430_p3 = scmp.ne.s32.totalorder %s29_s19, %s429_s27  ;;  %p435_p5 = scmp.lt.s32.totalorder %s429_s27, %s429_s27 }
   0xc   :  { %p436_p6 = por %p435_p5, %p434_p4 }
   0xe   :  { %p437_p7 = pnand %p436_p6, %p430_p3 }
  0x10   :  { %440 = shalt.err (!%p437_p7)
}
  0x11   :  { %s514_s28 = smov 128   ;;  %s515_s29 = smov 8  }
  0x12   :  { %34 = dma.hbm_to_vmem [thread:$0]  %s607_s1, 512, %s29_s19, [#allocation6], %s514_s28, %s514_s28, %s515_s29  }
  0x13   :  { %s516_s7 = smov [#allocation2]   ;;  %s517_s9 = smov [#allocation7]  }
  0x14   :  { %s19_s8 = sshll.u32 %s516_s7, 4  ;;  %s42_s10 = sshll.u32 %s517_s9, 4  ;;  %s20_s8 = int_to_ptr.vmem [resolvable:$true] %s19_s8  ;;  %s43_s10 = int_to_ptr.vmem [resolvable:$true] %s42_s10 }
  0x15   :  { %s441_s13 = scalar_lea.hbm %s606_s0, 128 }
  0x16   :  { %p442_p8 = scmp.ne.s32.totalorder %s606_s0, %s441_s13  ;;  %p445_p9 = scmp.lt.u32.totalorder %s441_s13, %s606_s0 }
  0x18   :  { %p447_p10 = pnand %p445_p9, %p442_p8 }
  0x1a   :  { %450 = shalt.err (!%p447_p10)
}
  0x1b   :  { %s451_s1 = scalar_lea.vmem %s20_s8, 128  ;;  %p456_p12 = scmp.lt.s32.totalorder %s20_s8, %s20_s8 }
  0x1c   :  { %p452_p11 = scmp.ne.s32.totalorder %s20_s8, %s451_s1  ;;  %p457_p13 = scmp.lt.s32.totalorder %s451_s1, %s451_s1 }
  0x1e   :  { %p458_p0 = por %p457_p13, %p456_p12 }
  0x20   :  { %p459_p1 = pnand %p458_p0, %p452_p11 }
  0x22   :  { %462 = shalt.err (!%p459_p1)
}
  0x23   :  { %22 = dma.hbm_to_vmem [thread:$0]  %s606_s0, 128, %s20_s8, [#allocation3]  }
  0x24   :  { %s463_s22 = scalar_lea.hbm %s609_s3, 2048 }
  0x25   :  { %p464_p2 = scmp.ne.s32.totalorder %s609_s3, %s463_s22  ;;  %p467_p3 = scmp.lt.u32.totalorder %s463_s22, %s609_s3 }
  0x27   :  { %p469_p4 = pnand %p467_p3, %p464_p2 }
  0x29   :  { %472 = shalt.err (!%p469_p4)
}
  0x2a   :  { %s473_s27 = scalar_lea.vmem %s43_s10, 2048  ;;  %p478_p6 = scmp.lt.s32.totalorder %s43_s10, %s43_s10 }
  0x2b   :  { %p474_p5 = scmp.ne.s32.totalorder %s43_s10, %s473_s27  ;;  %p479_p7 = scmp.lt.s32.totalorder %s473_s27, %s473_s27 }
  0x2d   :  { %p480_p8 = por %p479_p7, %p478_p6 }
  0x2f   :  { %p481_p9 = pnand %p480_p8, %p474_p5 }
  0x31   :  { %484 = shalt.err (!%p481_p9)
}
  0x32   :  { %s518_s0 = smov 64   ;;  %s519_s28 = smov 4  }
  0x33   :  { %48 = dma.hbm_to_vmem [thread:$0]  %s609_s3, 2048, %s43_s10, [#allocation6], %s518_s0, %s518_s0, %s519_s28  }
  0x34   :  { %507 = dma.done.wait [#allocation3], 128  }
  0x35   :  { %508 = vsyncadd [#allocation3], 4294967168 }
  0x36   :  { %509 = dma.done.wait [#allocation6], 2560  }
  0x37   :  { %510 = vsyncadd [#allocation6], 4294964736  ;;  %v520_v0 = vmov 0   ;;  %v393_v1 = vld [vmem:[#allocation5 + $0x4] ss:$8 sps:$4 sm:$0xff]   ;;  %v61_v5 = vld [vmem:[#allocation2] sm:$0xff]  ;;  %v69_v23 = vlaneseq }
  0x38   :  { %135 = vmatprep.mubr.bf16.mxu0 %v520_v0  ;;  %v395_v2 = vld [vmem:[#allocation5] ss:$8 sps:$4 sm:$0xff]   ;;  %103 = vmatprep.subr.bf16.mxu0 %v393_v1  ;;  %v396_v3 = vld [vmem:[#allocation5 + $0x14] ss:$8 sps:$4 sm:$0xff]   ;;  %v398_v4 = vld [vmem:[#allocation5 + $0x10] ss:$8 sps:$4 sm:$0xff]   ;;  %v62_v9 = vpack.c.bf16 %v61_v5, %v61_v5 }
  0x39   :  { %104 = vmatpush1.bf16.msra.mxu0 %v395_v2  ;;  %v399_v6 = vld [vmem:[#allocation7 + $0x40] sm:$0xff]   ;;  %v401_v8 = vld [vmem:[#allocation7 + $0x48] sm:$0xff]   ;;  %vm99_vm0 = vcmask 261120   ;;  %v403_v11 = vld [vmem:[#allocation7 + $0x50] sm:$0xff]   ;;  %v70_v24 = vshrl.u32 %v69_v23, 7  ;;  %s521_s8 = smov [#allocation8]  }
  0x3a   :  { %105 = vmatprep.subr.bf16.mxu0 %v396_v3  ;;  %v400_v7 = vld [vmem:[#allocation7] sm:$0xff]   ;;  %362 = vmatprep.subr.bf16.mxu1 %v399_v6  ;;  %v402_v10 = vld [vmem:[#allocation7 + $0x8] sm:$0xff]   ;;  %v404_v12 = vld [vmem:[#allocation7 + $0x10] sm:$0xff]   ;;  %s330_s9 = sshll.u32 %s521_s8, 4  ;;  %s331_s9 = int_to_ptr.vmem [resolvable:$true] %s330_s9 }
  0x3b   :  { %363 = vmatpush3.bf16.msra.mxu1 %v400_v7  ;;  %v405_v13 = vld [vmem:[#allocation7 + $0x58] sm:$0xff]   ;;  %v407_v15 = vld [vmem:[#allocation7 + $0x60] sm:$0xff]   ;;  %v409_v17 = vld [vmem:[#allocation7 + $0x68] sm:$0xff]   ;;  %v71_v25 = vsub.s32 0, %v70_v24  ;;  %v75_v27 = vsub.s32 1, %v70_v24  ;;  %s485_s10 = scalar_lea.vmem %s331_s9, 128  ;;  %p490_p11 = scmp.lt.s32.totalorder %s331_s9, %s331_s9 }
  0x3c   :  { %364 = vmatprep.subr.bf16.mxu1 %v401_v8  ;;  %v406_v14 = vld [vmem:[#allocation7 + $0x18] sm:$0xff]   ;;  %v408_v16 = vld [vmem:[#allocation7 + $0x20] sm:$0xff]   ;;  %v410_v18 = vld [vmem:[#allocation7 + $0x28] sm:$0xff]   ;;  %p486_p10 = scmp.ne.s32.totalorder %s331_s9, %s485_s10  ;;  %p491_p12 = scmp.lt.s32.totalorder %s485_s10, %s485_s10 }
  0x3d   :  { %106 = vmatpush1.bf16.msra.mxu0 %v398_v4  ;;  %v411_v19 = vld [vmem:[#allocation7 + $0x70] sm:$0xff]   ;;  %v413_v21 = vld [vmem:[#allocation7 + $0x78] sm:$0xff]  }
  0x3e   :  { %v412_v20 = vld [vmem:[#allocation7 + $0x30] sm:$0xff]   ;;  %v414_v22 = vld [vmem:[#allocation7 + $0x38] sm:$0xff]   ;;  %p492_p13 = por %p491_p12, %p490_p11 }
  0x3f   :  { %365 = vmatpush3.bf16.msra.mxu1 %v402_v10  ;;  %v67_v26 = vld [vmem:[%s608_s2] sm:$0x3] }
  0x40   :  { %344 = vmatmul.mubr.msk.bf16.vlgmr.msra.gmra.mrb[0].mxu0 %vm99_vm0, %v62_v9  ;;  %366 = vmatprep.subr.bf16.mxu1 %v403_v11  ;;  %v72_v28 = vrot.slane %v67_v26, %v71_v25  ;;  %v76_v29 = vrot.slane %v67_v26, %v75_v27  ;;  %v345_v41 = vld [vmem:[%s610_s4] ss:$0 sm:$0xff]  ;;  %p493_p0 = pnand %p492_p13, %p486_p10 }
  0x43   :  { %367 = vmatpush3.bf16.msra.mxu1 %v404_v12 }
  0x44   :  { %368 = vmatprep.subr.bf16.mxu1 %v405_v13 }
  0x47   :  { %369 = vmatpush3.bf16.msra.mxu1 %v406_v14 }
  0x48   :  { %370 = vmatprep.subr.bf16.mxu1 %v407_v15 }
  0x4b   :  { %371 = vmatpush3.bf16.msra.mxu1 %v408_v16 }
  0x4c   :  { %372 = vmatprep.subr.bf16.mxu1 %v409_v17 }
  0x4f   :  { %373 = vmatpush3.bf16.msra.mxu1 %v410_v18 }
  0x50   :  { %374 = vmatprep.subr.bf16.mxu1 %v411_v19 }
  0x53   :  { %375 = vmatpush3.bf16.msra.mxu1 %v412_v20 }
  0x54   :  { %376 = vmatprep.subr.bf16.mxu1 %v413_v21 }
  0x57   :  { %377 = vmatpush3.bf16.msra.mxu1 %v414_v22 }
 0x113   :  { %v137_v30 = vpop.f32.mrb[0].mxu0 }
 0x114   :  { %v138_v31 = vadd.f32 %v137_v30, %v72_v28  ;;  %v139_v32 = vpop.f32.mrb[1].mxu0 }
 0x115   :  { %v140_v33 = vadd.f32 %v139_v32, %v76_v29  ;;  %v141_v34 = vpop.f32.mrb[2].mxu0 }
 0x116   :  { %415 = vtanh.f32 %v138_v31  ;;  %v142_v35 = vpop.f32.mrb[3].mxu0 }
 0x117   :  { %417 = vtanh.f32 %v140_v33 }
 0x120   :  { %v416_v36 = vpop.eup %415 }
 0x121   :  { %v418_v37 = vpop.eup %417  ;;  %v146_v39 = vpack.c.bf16 %v416_v36, %v416_v36 }
 0x122   :  { %v147_v38 = vpack.c.bf16 %v418_v37, %v418_v37 }
 0x124   :  { %315 = vmatprep.mubr.bf16.mxu1 %v147_v38 }
 0x125   :  { %316 = vmatmul.mubr.bf16.vlgmr.msra.gmra.mrb[0].mxu1 %v146_v39 }
 0x1f8   :  { %v378_v40 = vpop.f32.mrb[0].mxu1 }
 0x1f9   :  { %v379_v42 = vpop.f32.mrb[1].mxu1 }
 0x1fa   :  { %v380_v43 = vadd.f32 %v379_v42, %v378_v40  ;;  %v381_v44 = vpop.f32.mrb[2].mxu1 }
 0x1fb   :  { %v382_v45 = vpop.f32.mrb[3].mxu1 }
 0x1fc   :  { %v318_v46 = vadd.f32 %v380_v43, %v345_v41 }
 0x1fe   :  { %323 = vst [vmem:[#allocation8] sm:$0xff] %v318_v46 }
 0x1ff   :  { %496 = shalt.err (!%p493_p0)
}
 0x200   :  { %s497_s4 = scalar_lea.hbm %s611_s5, 128 }
 0x201   :  { %p498_p1 = scmp.ne.s32.totalorder %s611_s5, %s497_s4  ;;  %p501_p2 = scmp.lt.u32.totalorder %s497_s4, %s611_s5 }
 0x203   :  { %p503_p3 = pnand %p501_p2, %p498_p1 }
 0x205   :  { %506 = shalt.err (!%p503_p3)
}
 0x206   :  { %333 = dma.vmem_to_hbm [thread:$0]  %s331_s9, 128, %s611_s5, [#allocation4]  }
 0x207   :  { %511 = dma.done.wait [#allocation4], 128  }
 0x208   :  { %512 = vsyncadd [#allocation4], 4294967168 }
 0x209   :  { %337 = vsyncpa [#allocation3], 1 }
 0x20a   :  { %338 = vsyncpa [#allocation6], 1 }
 0x20b   :  { %339 = vsyncpa [#allocation4], 1 }

</bundles_post_ra>
